<compile_context>
chip_gen: v5e
topology: v5e:2x2
jax: 0.10.0
libtpu: 0.0.40
codegen_flags: <defaults>
</compile_context>

<pallas_src>
import jax
import jax.numpy as jnp
from jax import lax
from jax.experimental import pallas as pl
from jax.experimental.pallas import tpu as pltpu


def _round_up(x: int, m: int) -> int:
    return ((x + m - 1) // m) * m


def _pick_tile(dim_pad: int, cap: int) -> int:
    """Largest tile <= cap dividing dim_pad (dim_pad is <=128 full-extent or a
    multiple of 128)."""
    if dim_pad <= cap:
        return dim_pad
    for t in (1024, 512, 256, 128):
        if t <= cap and dim_pad % t == 0:
            return t
    return 128


# ----------------------------------------------------------------------------
# Kernels
# ----------------------------------------------------------------------------
def _linear_kernel_k1(x_ref, w_ref, b_ref, o_ref):
    """Single-K-tile variant: no accumulator scratch, no predication.

    x_ref: (tm, K)  activations (compute dtype, e.g. bf16)
    w_ref: (tn, K)  weight tile in PyTorch (out, in) layout -- no transpose
    b_ref: (1, tn)  f32 bias tile
    o_ref: (tm, tn) output tile
    """
    acc = lax.dot_general(
        x_ref[...], w_ref[...],
        dimension_numbers=(((1,), (1,)), ((), ())),
        preferred_element_type=jnp.float32,
    )
    o_ref[...] = (acc + b_ref[...]).astype(o_ref.dtype)


def _linear_kernel_acc(x_ref, w_ref, b_ref, o_ref, acc_ref):
    """Multi-K-tile variant with f32 accumulator (K is the innermost grid axis)."""
    k = pl.program_id(2)

    @pl.when(k == 0)
    def _():
        acc_ref[...] = jnp.zeros_like(acc_ref)

    acc_ref[...] += lax.dot_general(
        x_ref[...], w_ref[...],
        dimension_numbers=(((1,), (1,)), ((), ())),
        preferred_element_type=jnp.float32,
    )

    @pl.when(k == pl.num_programs(2) - 1)
    def _():
        o_ref[...] = (acc_ref[...] + b_ref[...]).astype(o_ref.dtype)


# ----------------------------------------------------------------------------
# Params prep (one-time, outside the per-call hot path)
# ----------------------------------------------------------------------------
def prepare_linear_params(weight, bias, *, compute_dtype=jnp.bfloat16):
    """Cast weight to the MXU compute dtype and pad to the minimal lane-dense
    shape: N -> multiple of 128; K untouched when in_features <= 128 (a block
    dim equal to the full array extent is legal), else multiple of 128.
    PyTorch (out_features, in_features) layout is kept -- no transpose."""
    out_f, in_f = weight.shape
    n_pad = _round_up(out_f, 128)
    k_pad = in_f if in_f <= 128 else _round_up(in_f, 128)
    w = jnp.pad(weight, ((0, n_pad - out_f), (0, k_pad - in_f))).astype(compute_dtype)
    b = jnp.pad(bias, (0, n_pad - out_f)).astype(jnp.float32).reshape(1, n_pad)
    return w, b


# ----------------------------------------------------------------------------
# Forward
# ----------------------------------------------------------------------------
def linear_forward(x, w_prepped, b_prepped, out_features, *,
                   compute_dtype=jnp.bfloat16, out_dtype=None,
                   force_pallas=False, small_macs_threshold=1 << 20):
    """y = x @ W^T + b with W/b pre-prepped by `prepare_linear_params`.

    x: (batch, in_features) -> (batch, out_features) in out_dtype (default x.dtype).
    Tiny problems fall back to plain XLA unless force_pallas=True.
    """
    batch, in_features = x.shape
    n_pad, k_pad = w_prepped.shape
    out_dtype = out_dtype or x.dtype

    # --- Small-shape fallback: launch + padding overhead beats any custom
    # kernel below ~1M MACs on v5e/v6e/v7x. ----------------------------------
    if not force_pallas and batch * n_pad * k_pad < small_macs_threshold:
        y = lax.dot_general(
            x.astype(compute_dtype), w_prepped[:, :in_features],
            dimension_numbers=(((1,), (1,)), ((), ())),
            preferred_element_type=jnp.float32,
        )
        return (y + b_prepped[0]).astype(out_dtype)[:, :out_features]

    # --- Shape-adaptive tile selection ---------------------------------------
    tm = min(512, _round_up(batch, 16))
    m_pad = _round_up(batch, tm)
    tn = _pick_tile(n_pad, 512)
    tk = _pick_tile(k_pad, 1024)
    gm = m_pad // tm

    # v7x megacore: if M is a single tile and N would also be a single tile,
    # split N so both TensorCores get a "parallel" tile (no-op on v5e/v6e).
    if gm == 1 and n_pad // tn == 1 and n_pad % 256 == 0:
        tn = n_pad // 2

    gn, gk = n_pad // tn, k_pad // tk
    # VMEM budget (worst case tm=tn=512, tk=1024, f32 out):
    #   2*x(2 MiB) + 2*W(2 MiB) + acc(1 MiB) + 2*out(2 MiB) ~= 7 MiB,
    # well under the 32 MiB default scoped limit on v7x (64 MiB physical).

    # Single fused pad+cast pass over x (or just a cast when no padding needed).
    if (m_pad, k_pad) != (batch, in_features):
        x_c = jnp.pad(x, ((0, m_pad - batch), (0, k_pad - in_features))).astype(compute_dtype)
    else:
        x_c = x.astype(compute_dtype)

    cd_size = jnp.dtype(compute_dtype).itemsize
    cost = pl.CostEstimate(
        flops=2 * m_pad * n_pad * k_pad,
        transcendentals=0,
        bytes_accessed=(gn * m_pad * k_pad * cd_size          # x streamed once per N tile
                        + gm * n_pad * k_pad * cd_size        # W streamed once per M tile
                        + gm * n_pad * 4                      # bias re-read per M tile
                        + m_pad * n_pad * jnp.dtype(out_dtype).itemsize),
    )

    if gk == 1:
        # K fits one tile: no accumulator, no pl.when, 2-D parallel grid.
        y_pad = pl.pallas_call(
            _linear_kernel_k1,
            out_shape=jax.ShapeDtypeStruct((m_pad, n_pad), out_dtype),
            grid=(gm, gn),
            in_specs=[
                pl.BlockSpec((tm, tk), lambda i, j: (i, 0)),   # x
                pl.BlockSpec((tn, tk), lambda i, j: (j, 0)),   # W (out, in)
                pl.BlockSpec((1, tn), lambda i, j: (0, j)),    # bias
            ],
            out_specs=pl.BlockSpec((tm, tn), lambda i, j: (i, j)),
            compiler_params=pltpu.CompilerParams(
                dimension_semantics=("parallel", "parallel")),
            cost_estimate=cost,
        )(x_c, w_prepped, b_prepped)
    else:
        y_pad = pl.pallas_call(
            _linear_kernel_acc,
            out_shape=jax.ShapeDtypeStruct((m_pad, n_pad), out_dtype),
            grid=(gm, gn, gk),
            in_specs=[
                pl.BlockSpec((tm, tk), lambda i, j, k: (i, k)),   # x
                pl.BlockSpec((tn, tk), lambda i, j, k: (j, k)),   # W (out, in)
                pl.BlockSpec((1, tn), lambda i, j, k: (0, j)),    # bias (N-resident)
            ],
            out_specs=pl.BlockSpec((tm, tn), lambda i, j, k: (i, j)),
            scratch_shapes=[pltpu.VMEM((tm, tn), jnp.float32)],
            compiler_params=pltpu.CompilerParams(
                dimension_semantics=("parallel", "parallel", "arbitrary")),
            cost_estimate=cost,
        )(x_c, w_prepped, b_prepped)

    if (m_pad, n_pad) == (batch, out_features):
        return y_pad                       # no post-kernel copy
    return y_pad[:batch, :out_features]


if __name__ == "__main__":
    # TODO(synk): edge_index / edge_attr / parenthood / batch args of forward()
    # are unused by the module; only the nn.Linear is implemented.

    # ---- Primary check: module-implied shape LinearModel(32, 16), batch=8 ----
    batch, in_features, out_features = 8, 32, 16
    key = jax.random.PRNGKey(0)
    kx, kw, kb = jax.random.split(key, 3)

    x = jax.random.normal(kx, (batch, in_features), dtype=jnp.float32)
    bound = 1.0 / (in_features ** 0.5)  # nn.Linear-style init
    weight = jax.random.uniform(kw, (out_features, in_features),
                                minval=-bound, maxval=bound, dtype=jnp.float32)
    bias = jax.random.uniform(kb, (out_features,),
                              minval=-bound, maxval=bound, dtype=jnp.float32)

    w_prepped, b_prepped = prepare_linear_params(weight, bias)
    y_ref = x @ weight.T + bias

    # Force the Pallas path (gk==1 specialized kernel) to exercise it on TPU.
    y_pallas = linear_forward(x, w_prepped, b_prepped, out_features, force_pallas=True)
    jax.block_until_ready(y_pallas)
    assert y_pallas.shape == (batch, out_features)
    assert jnp.allclose(y_pallas, y_ref, atol=2e-2, rtol=2e-2)

    # Default dispatch for this tiny shape takes the XLA fallback; check it too.
    y_fallback = linear_forward(x, w_prepped, b_prepped, out_features)
    jax.block_until_ready(y_fallback)
    assert jnp.allclose(y_fallback, y_ref, atol=2e-2, rtol=2e-2)

    # ---- Secondary check: exercises the K-accumulator kernel (gk > 1) and the
    # dual-TC N split, still a small problem. ----------------------------------
    b2, in2, out2 = 32, 1280, 256
    k2 = jax.random.PRNGKey(1)
    k2x, k2w, k2b = jax.random.split(k2, 3)
    x2 = jax.random.normal(k2x, (b2, in2), dtype=jnp.float32)
    bound2 = 1.0 / (in2 ** 0.5)
    w2 = jax.random.uniform(k2w, (out2, in2), minval=-bound2, maxval=bound2,
                            dtype=jnp.float32)
    bias2 = jax.random.uniform(k2b, (out2,), minval=-bound2, maxval=bound2,
                               dtype=jnp.float32)
    w2_p, b2_p = prepare_linear_params(w2, bias2)
    y2 = linear_forward(x2, w2_p, b2_p, out2, force_pallas=True)
    jax.block_until_ready(y2)
    y2_ref = x2 @ w2.T + bias2
    assert y2.shape == (b2, out2)
    assert jnp.allclose(y2, y2_ref, atol=5e-2, rtol=5e-2)

    print("KERNEL_OK")
</pallas_src>

<mosaic_0001>
module attributes {stable_mosaic.version = 11 : i64} {
  func.func @_linear_kernel_k1(%arg0: i32, %arg1: i32, %arg2: memref<16x32xbf16, #tpu.memory_space<vmem>>, %arg3: memref<128x32xbf16, #tpu.memory_space<vmem>>, %arg4: memref<1x128xf32, #tpu.memory_space<vmem>>, %arg5: memref<16x128xf32, #tpu.memory_space<vmem>>) attributes {dimension_semantics = [#tpu.dimension_semantics<parallel>, #tpu.dimension_semantics<parallel>], iteration_bounds = array<i64: 1, 1>, scalar_prefetch = 0 : i64, scratch_operands = 0 : i64, tpu.core_type = #tpu.core_type<tc>, window_params = [{transform_indices = @transform_0, window_bounds = array<i64: 16, 32>}, {transform_indices = @transform_1, window_bounds = array<i64: 128, 32>}, {transform_indices = @transform_2, window_bounds = array<i64: 1, 128>}, {transform_indices = @transform_3, window_bounds = array<i64: 16, 128>}]} {
    %c0 = arith.constant 0 : index
    %c0_0 = arith.constant 0 : index
    %0 = vector.load %arg2[%c0, %c0_0] : memref<16x32xbf16, #tpu.memory_space<vmem>>, vector<16x32xbf16>
    %c0_1 = arith.constant 0 : index
    %c0_2 = arith.constant 0 : index
    %1 = vector.load %arg3[%c0_1, %c0_2] : memref<128x32xbf16, #tpu.memory_space<vmem>>, vector<128x32xbf16>
    %cst = arith.constant dense<0.000000e+00> : vector<16x128xf32>
    %2 = tpu.matmul %0, %1, %cst {dimension_numbers = #tpu.dot_dimension_numbers<[1], [1], [0], [0], [0, 0, 1, 0], [], []>} : vector<16x32xbf16>, vector<128x32xbf16>, vector<16x128xf32> -> vector<16x128xf32>
    %c0_3 = arith.constant 0 : index
    %c0_4 = arith.constant 0 : index
    %3 = vector.load %arg4[%c0_3, %c0_4] : memref<1x128xf32, #tpu.memory_space<vmem>>, vector<1x128xf32>
    %4 = vector.broadcast %3 : vector<1x128xf32> to vector<16x128xf32>
    %5 = arith.addf %2, %4 : vector<16x128xf32>
    %c0_5 = arith.constant 0 : index
    %c0_6 = arith.constant 0 : index
    %6 = vector.load %arg5[%c0_5, %c0_6] : memref<16x128xf32, #tpu.memory_space<vmem>>, vector<16x128xf32>
    tpu.vector_store %arg5[%c0_5, %c0_6], %5 {strides = array<i32>} : memref<16x128xf32, #tpu.memory_space<vmem>>, vector<16x128xf32>,
    return
  }
  func.func @transform_0(%arg0: i32, %arg1: i32) -> (i32, i32) {
    %c0_i32 = arith.constant 0 : i32
    %c0_i32_0 = arith.constant 0 : i32
    return %arg0, %c0_i32 : i32, i32
  }
  func.func @transform_1(%arg0: i32, %arg1: i32) -> (i32, i32) {
    %c0_i32 = arith.constant 0 : i32
    %c0_i32_0 = arith.constant 0 : i32
    return %arg1, %c0_i32 : i32, i32
  }
  func.func @transform_2(%arg0: i32, %arg1: i32) -> (i32, i32) {
    %c0_i32 = arith.constant 0 : i32
    %c0_i32_0 = arith.constant 0 : i32
    return %c0_i32, %arg1 : i32, i32
  }
  func.func @transform_3(%arg0: i32, %arg1: i32) -> (i32, i32) {
    %c0_i32 = arith.constant 0 : i32
    return %arg0, %arg1 : i32, i32
  }
}

</mosaic_0001>

<bundles_post_ra>
// kernel: tpu_custom_call.1
= control target key start
LH: loop header
LB: loop body
LE: loop exit
PB: predicated region body
PF: predicated region fallthrough
CT: control target
= control target key end

     0   :  { %vm82_vm0 = vcmask 261120   ;;  %s285_s0 = inlined_call_operand.vmem [shape: bf16[16,32], index: 0, kind: input, shape index: {}]   ;;  %s286_s1 = inlined_call_operand.vmem [shape: bf16[128,32], index: 1, kind: input, shape index: {}]   ;;  %s287_s2 = inlined_call_operand.vmem [shape: f32[1,128], index: 2, kind: input, shape index: {}]   ;;  %s288_s3 = inlined_call_operand.hbm [shape: f32[16,128], index: 3, kind: output, shape index: {}]  }
   0x1   :  { %v189_v0 = vld [vmem:[%s286_s1 + $0x38] sm:$0xff] }
   0x2   :  { %v108_v1 = vsel %vm82_vm0, %v189_v0, 0 }
   0x3   :  { %8 = vsyncpa [#allocation3], 0  ;;  %110 = vmatpush.bf16.xpose.msra.mxu0 %v108_v1  ;;  %v188_v2 = vld [vmem:[%s286_s1 + $0x30] sm:$0xff]  ;;  %v187_v4 = vld [vmem:[%s286_s1 + $0x28] sm:$0xff]  ;;  %s220_s5 = smov [#allocation2]   ;;  %s132_s8 = sshll.u32 %s288_s3, 4  ;;  %s133_s8 = int_to_ptr.hbm [resolvable:$true] %s132_s8 }
   0x4   :  { %v105_v3 = vsel %vm82_vm0, %v188_v2, 0  ;;  %v102_v5 = vsel %vm82_vm0, %v187_v4, 0  ;;  %v186_v6 = vld [vmem:[%s286_s1 + $0x20] sm:$0xff]  ;;  %v185_v8 = vld [vmem:[%s286_s1 + $0x18] sm:$0xff]  ;;  %v184_v10 = vld [vmem:[%s286_s1 + $0x10] sm:$0xff]  ;;  %s130_s6 = sshll.u32 %s220_s5, 4  ;;  %s131_s6 = int_to_ptr.vmem [resolvable:$true] %s130_s6 }
   0x5   :  { %v99_v7 = vsel %vm82_vm0, %v186_v6, 0  ;;  %v96_v9 = vsel %vm82_vm0, %v185_v8, 0  ;;  %v93_v11 = vsel %vm82_vm0, %v184_v10, 0  ;;  %v183_v12 = vld [vmem:[%s286_s1 + $0x8] sm:$0xff]  ;;  %v182_v14 = vld [vmem:[%s286_s1] sm:$0xff]  ;;  %s222_s9 = smov 8  }
   0x6   :  { %v90_v13 = vsel %vm82_vm0, %v183_v12, 0  ;;  %v87_v15 = vsel %vm82_vm0, %v182_v14, 0  ;;  %v181_v16 = vld [vmem:[%s285_s0] sm:$0xff]  ;;  %s221_s0 = smov 128  }
   0x7   :  { %v193_v17 = vld [vmem:[%s287_s2] ss:$0 sm:$0xff] }
   0xb   :  { %111 = vmatpush.bf16.xpose.msra.mxu0 %v105_v3 }
  0x13   :  { %112 = vmatpush.bf16.xpose.msra.mxu0 %v102_v5 }
  0x1b   :  { %113 = vmatpush.bf16.xpose.msra.mxu0 %v99_v7 }
  0x23   :  { %114 = vmatpush.bf16.xpose.msra.mxu0 %v96_v9 }
  0x2b   :  { %115 = vmatpush.bf16.xpose.msra.mxu0 %v93_v11 }
  0x33   :  { %116 = vmatpush.bf16.xpose.msra.mxu0 %v90_v13 }
  0x3b   :  { %117 = vmatpush.bf16.xpose.msra.mxu0 %v87_v15 }
  0x42   :  { %180 = vmatmul.msk.bf16.vlgmr.msra.gmra.mxu0 %vm82_vm0, %v181_v16 }
  0xbf   :  { %v119_v18 = vpop.f32.mrf.mxu0 }
  0xc0   :  { %v120_v19 = vadd.f32 %v193_v17, %v119_v18 }
  0xc2   :  { %124 = vst [vmem:[#allocation2] sm:$0xff] %v120_v19 }
  0xc7   :  { %v121_v20 = vpop.f32.mrf.mxu0 }
  0xc8   :  { %v122_v21 = vadd.f32 %v193_v17, %v121_v20 }
  0xca   :  { %125 = vst [vmem:[#allocation2 + $0x8] sm:$0xff] %v122_v21 }
  0xcb   :  { %138 = dma.vmem_to_hbm [thread:$0]  %s131_s6, 256, %s133_s8, [#allocation3], %s221_s0, %s221_s0, %s222_s9  }
  0xcc   :  { %218 = dma.done.wait [#allocation3], 256  }
  0xcd   :  { %219 = vsyncadd [#allocation3], 4294967040 }
  0xce   :  { %143 = vsyncpa [#allocation3], 1 }

</bundles_post_ra>
